<compile_context>
chip_gen: v6e
topology: v6e:2x2x1
jax: 0.10.0
libtpu: 0.0.40
codegen_flags: <defaults>
</compile_context>

<pallas_src>
import math
import numpy as np
import jax
import jax.numpy as jnp
from jax.experimental import pallas as pl
from jax.experimental.pallas import tpu as pltpu

# ---------------- static configuration (consistent with GAttNet) -----------------
B = 2             # batch_size
N = 16            # num_rois
FIN = 32          # in_feat_dim
FOUT = 32         # out_feat_dim
LBL = 3           # label_num (edge labels)
DIR = 2           # dir_num
H = 4             # num_heads (FOUT % H == 0)
DH = FOUT // H    # per-head dim
NONGT_DIM = 8     # nongt_dim
NONGT = min(NONGT_DIM, N)
NEG = -9e15
SCALE = 1.0 / math.sqrt(float(DH))

DF = DIR * FOUT          # 64   both directions' feature width
BDF = B * DF             # 128  batch-fused lane width
BLKS = B * DIR * H       # 16   (batch, dir, head) blocks
RTOT = BLKS * N          # 256  rows of the block-diagonal Q / value result
WTOT = FOUT + 3 * DF     # 224  fused projection width: self | q | k | v@Wc


# ------------------------------- Pallas kernel -----------------------------------
def gattnet_kernel(v_ref, w_ref, b_ref, plane_ref, pat_ref, out_ref):
    f32 = jnp.float32

    # 1) single fused projection: self | q(both dirs, scaled) | k | v@Wc   -> [B*N, WTOT]
    proj = jnp.dot(v_ref[...], w_ref[...], preferred_element_type=f32) + b_ref[...]
    self_feat = proj[:, 0:FOUT]                  # [32, 32]  (conv biases pre-folded in)
    q_all = proj[:, FOUT:FOUT + DF]              # [32, 64]
    k_all = proj[:, FOUT + DF:FOUT + 2 * DF]     # [32, 64]
    vw_all = proj[:, FOUT + 2 * DF:WTOT]         # [32, 64]  (grouped 1x1 conv folded in)

    # 2) lane-concat the two batches -> [*, B*DF = 128] (lane-dense)
    q_cat = jnp.concatenate([q_all[0:N], q_all[N:2 * N]], axis=1)               # [16, 128]
    k_cat = jnp.concatenate([k_all[0:NONGT], k_all[N:N + NONGT]], axis=1)       # [ 8, 128]
    vw_cat = jnp.concatenate([vw_all[0:NONGT], vw_all[N:N + NONGT]], axis=1)    # [ 8, 128]

    pat = pat_ref[...]                           # [BLKS, BDF] 0/1 block-diagonal selector

    # 3) block-diagonal Q over (batch, dir, head): row blk*N+n keeps only its DH columns
    q_big = (q_cat[None, :, :] * pat[:, None, :]).reshape(RTOT, BDF)            # [256, 128]

    # 4) ONE logits matmul for every (batch, dir, head, query); keys on the sublane axis
    aff = jax.lax.dot_general(k_cat, q_big, (((1,), (1,)), ((), ())),
                              preferred_element_type=f32)                       # [8, 256]

    # 5) merged adjacency-mask + edge-label-bias plane (single additive operand).
    #    Masked keys take exactly the reference's (NEG + vbias) value, so fully-masked
    #    rows still reproduce the reference's vbias-only softmax.
    plane = plane_ref[...]                                                      # [8, 256]
    logits = jnp.where(plane > -1e14, aff + plane, plane)

    # 6) softmax over the key axis = the 8 sublanes of a 2-vreg slab
    mx = jnp.max(logits, axis=0, keepdims=True)
    e = jnp.exp(logits - mx)
    p = e * pl.reciprocal(jnp.sum(e, axis=0, keepdims=True), approx=True)

    # 7) ONE value matmul (grouped conv already folded into vw_cat)
    res = jax.lax.dot_general(p, vw_cat, (((0,), (0,)), ((), ())),
                              preferred_element_type=f32)                       # [256, 128]

    # 8) masked (batch, dir, head) block reduction -> [N, B*DF]
    s = jnp.sum(res.reshape(BLKS, N, BDF) * pat[:, None, :], axis=0)            # [16, 128]

    # 9) sum the two direction halves per batch (cross-batch quarters are zero), add self, ReLU
    c0 = s[:, 0:FOUT] + s[:, FOUT:2 * FOUT]                   # batch 0  [16, 32]
    c1 = s[:, 2 * FOUT:3 * FOUT] + s[:, 3 * FOUT:4 * FOUT]    # batch 1  [16, 32]
    contrib = jnp.concatenate([c0, c1], axis=0)               # [B*N, FOUT]

    # TODO(synk): nn.Dropout layers are treated as identity (eval mode); no RNG parity.
    out_ref[...] = jnp.maximum(self_feat + contrib, 0.0)


# ---------------- one-time, input-independent parameter packing -------------------
def pack_params(p):
    ws_t = p["ws"].T                                                         # [FIN, FOUT]
    wq_cat = jnp.concatenate([p["wq"][d].T for d in range(DIR)], axis=1)     # [FOUT, DF]
    wk_cat = jnp.concatenate([p["wk"][d].T for d in range(DIR)], axis=1)     # [FOUT, DF]
    # wc: [DIR, H, DH, FOUT] -> union [FOUT, DF] with column d*FOUT + h*DH + e
    wc_union = jnp.transpose(p["wc"], (3, 0, 1, 2)).reshape(FOUT, DF)        # [FOUT, DF]

    w_fused = jnp.concatenate(
        [ws_t, (ws_t @ wq_cat) * SCALE, ws_t @ wk_cat, ws_t @ wc_union],
        axis=1)                                                              # [FIN, WTOT]

    bs = p["bs"][0]                                                          # [FOUT]
    b_fused = jnp.concatenate(
        [bs + jnp.sum(p["bc"], axis=0),                     # self column, conv biases folded
         (bs @ wq_cat + p["bq"].reshape(DF)) * SCALE,
         bs @ wk_cat + p["bk"].reshape(DF),
         bs @ wc_union])[None, :]                                            # [1, WTOT]

    # block-diagonal (batch, dir, head) selector: row block rb keeps columns rb*DH..rb*DH+DH
    rb = np.arange(BLKS)[:, None]
    cb = np.arange(BDF)[None, :] // DH
    pattern = jnp.asarray(rb == cb, dtype=jnp.float32)                       # [BLKS, BDF]

    return dict(w_fused=w_fused, b_fused=b_fused, pattern=pattern,
                wb=p["wb"][0], bb=p["bb"][0, 0])


# ------------------------------- forward wrapper ----------------------------------
@jax.jit
def gattnet_forward(v_feat, adj_matrix, packed):
    adj = adj_matrix.astype(jnp.float32)
    # direction 0: adj ; direction 1: adj.transpose(1, 2)
    adj_d = jnp.stack([adj[:, :, :NONGT, :],
                       jnp.transpose(adj, (0, 2, 1, 3))[:, :, :NONGT, :]])   # [DIR,B,N,M,LBL]
    cond = jnp.sum(adj_d, axis=-1)                                           # [DIR,B,N,M]
    vbias = jnp.einsum('dbnml,l->dbnm', adj_d, packed["wb"]) + packed["bb"]
    # single additive plane: vbias where connected, NEG + vbias where masked
    plane_d = vbias + jnp.where(cond > 0, 0.0, NEG)                          # [DIR,B,N,M]
    # -> [M, (b, d, h, n)] lane-dense, broadcast over heads
    p1 = jnp.transpose(plane_d, (3, 1, 0, 2))                                # [M,B,DIR,N]
    plane = jnp.broadcast_to(p1[:, :, :, None, :],
                             (NONGT, B, DIR, H, N)).reshape(NONGT, RTOT)     # [8, 256]

    v_in = v_feat.reshape(B * N, FIN)

    vmem = pltpu.MemorySpace.VMEM
    out = pl.pallas_call(
        gattnet_kernel,
        out_shape=jax.ShapeDtypeStruct((B * N, FOUT), jnp.float32),
        in_specs=[pl.BlockSpec(memory_space=vmem)] * 5,
        out_specs=pl.BlockSpec(memory_space=vmem),
    )(v_in, packed["w_fused"], packed["b_fused"], plane, packed["pattern"])
    return out.reshape(B, N, FOUT)


# -------------------- deterministic parameter initialization ----------------------
def _wn(v, g):
    # weight_norm with dim=None: w = g * v / ||v||_F  (g scalar)
    return g * v / jnp.sqrt(jnp.sum(v * v))


def init_params(key):
    ks = jax.random.split(key, 16)

    def nrm(k, shape, s=0.1):
        return s * jax.random.normal(k, shape, jnp.float32)

    ws = _wn(nrm(ks[0], (FOUT, FIN)), 1.2)
    bs = nrm(ks[1], (1, FOUT))
    wb = _wn(nrm(ks[2], (1, LBL)), 0.8)
    bb = nrm(ks[3], (1, 1))
    wq = jnp.stack([_wn(nrm(ks[4 + d], (FOUT, FOUT)), 1.0 + 0.1 * d) for d in range(DIR)])
    bq = jnp.stack([nrm(ks[6 + d], (FOUT,)) for d in range(DIR)])
    wk = jnp.stack([_wn(nrm(ks[8 + d], (FOUT, FOUT)), 0.9 + 0.1 * d) for d in range(DIR)])
    bk = jnp.stack([nrm(ks[10 + d], (FOUT,)) for d in range(DIR)])
    # grouped conv weight: [FOUT(out), FOUT(in per group)] -> [H, DH, FOUT]
    wc_full = jnp.stack([_wn(nrm(ks[12 + d], (FOUT, FOUT)), 1.1) for d in range(DIR)])
    wc = wc_full.reshape(DIR, H, DH, FOUT)
    bc = jnp.stack([nrm(ks[14 + d], (FOUT,)) for d in range(DIR)])
    return dict(ws=ws, bs=bs, wb=wb, bb=bb, wq=wq, bq=bq, wk=wk, bk=bk, wc=wc, bc=bc)


# ------------------------------- pure-JAX reference --------------------------------
def gattnet_reference(v_feat, adj_matrix, p):
    adj = adj_matrix.astype(jnp.float32)
    self_feat = v_feat @ p["ws"].T + p["bs"]
    out = self_feat
    adj_list = [adj, jnp.transpose(adj, (0, 2, 1, 3))]
    for d in range(DIR):
        inp = adj_list[d][:, :, :NONGT, :]
        cond = jnp.sum(inp, axis=-1)
        vbias = jnp.einsum('bnml,l->bnm', inp, p["wb"][0]) + p["bb"][0, 0]
        roi = self_feat
        vdat = roi[:, :NONGT, :]
        q = roi @ p["wq"][d].T + p["bq"][d]
        k = vdat @ p["wk"][d].T + p["bk"][d]
        qb = q.reshape(B, N, H, DH).transpose(0, 2, 1, 3)
        kb = k.reshape(B, NONGT, H, DH).transpose(0, 2, 1, 3)
        aff = jnp.einsum('bhnd,bhmd->bhnm', qb, kb) * SCALE
        aff = jnp.transpose(aff, (0, 2, 1, 3))            # [B,N,H,M]
        wat = jnp.transpose(aff, (0, 1, 3, 2))            # [B,N,M,H]
        masked = jnp.where(cond[..., None] > 0, wat, NEG) + vbias[..., None]
        waff = jnp.transpose(masked, (0, 1, 3, 2))        # [B,N,H,M]
        sm = jax.nn.softmax(waff, axis=3)
        ot = jnp.einsum('bnhm,bmd->bnhd', sm, vdat)
        res = jnp.einsum('bnhd,hed->bnhe', ot, p["wc"][d]) + p["bc"][d].reshape(H, DH)
        out = out + res.reshape(B, N, FOUT)
    return jax.nn.relu(out)


# ----------------------------------- main -------------------------------------------
if __name__ == "__main__":
    key = jax.random.PRNGKey(0)
    k_v, k_a, k_p = jax.random.split(key, 3)
    v_feat = jax.random.normal(k_v, (B, N, FIN), jnp.float32)
    adj_matrix = (jax.random.uniform(k_a, (B, N, N, LBL)) > 0.5).astype(jnp.float32)
    params = init_params(k_p)
    packed = pack_params(params)        # one-time packing, hoisted out of the forward

    out = gattnet_forward(v_feat, adj_matrix, packed)
    out = jax.block_until_ready(out)

    ref = gattnet_reference(v_feat, adj_matrix, params)
    np.testing.assert_allclose(np.asarray(out), np.asarray(ref), rtol=2e-2, atol=2e-2)
    print("KERNEL_OK")
</pallas_src>

<mosaic_0001>
module attributes {stable_mosaic.version = 11 : i64} {
  func.func @gattnet_kernel(%arg0: memref<32x32xf32, #tpu.memory_space<vmem>>, %arg1: memref<32x224xf32, #tpu.memory_space<vmem>>, %arg2: memref<1x224xf32, #tpu.memory_space<vmem>>, %arg3: memref<8x256xf32, #tpu.memory_space<vmem>>, %arg4: memref<16x128xf32, #tpu.memory_space<vmem>>, %arg5: memref<32x32xf32, #tpu.memory_space<vmem>>) attributes {dimension_semantics = [], scalar_prefetch = 0 : i64, scratch_operands = 0 : i64, tpu.core_type = #tpu.core_type<tc>} {
    %c0 = arith.constant 0 : index
    %c0_0 = arith.constant 0 : index
    %0 = vector.load %arg0[%c0, %c0_0] : memref<32x32xf32, #tpu.memory_space<vmem>>, vector<32x32xf32>
    %c0_1 = arith.constant 0 : index
    %c0_2 = arith.constant 0 : index
    %1 = vector.load %arg1[%c0_1, %c0_2] : memref<32x224xf32, #tpu.memory_space<vmem>>, vector<32x224xf32>
    %cst = arith.constant dense<0.000000e+00> : vector<32x224xf32>
    %2 = tpu.matmul %0, %1, %cst {dimension_numbers = #tpu.dot_dimension_numbers<[1], [0], [0], [1], [0, 0, 1, 1], [], []>} : vector<32x32xf32>, vector<32x224xf32>, vector<32x224xf32> -> vector<32x224xf32>
    %c0_3 = arith.constant 0 : index
    %c0_4 = arith.constant 0 : index
    %3 = vector.load %arg2[%c0_3, %c0_4] : memref<1x224xf32, #tpu.memory_space<vmem>>, vector<1x224xf32>
    %4 = vector.broadcast %3 : vector<1x224xf32> to vector<32x224xf32>
    %5 = arith.addf %2, %4 : vector<32x224xf32>
    %6 = vector.extract_strided_slice %5 {offsets = [0, 0], sizes = [32, 32], strides = [1, 1]} : vector<32x224xf32> to vector<32x32xf32>
    %7 = vector.extract_strided_slice %5 {offsets = [0, 32], sizes = [32, 64], strides = [1, 1]} : vector<32x224xf32> to vector<32x64xf32>
    %8 = vector.extract_strided_slice %5 {offsets = [0, 96], sizes = [32, 64], strides = [1, 1]} : vector<32x224xf32> to vector<32x64xf32>
    %9 = vector.extract_strided_slice %5 {offsets = [0, 160], sizes = [32, 64], strides = [1, 1]} : vector<32x224xf32> to vector<32x64xf32>
    %10 = vector.extract_strided_slice %7 {offsets = [0, 0], sizes = [16, 64], strides = [1, 1]} : vector<32x64xf32> to vector<16x64xf32>
    %11 = vector.extract_strided_slice %7 {offsets = [16, 0], sizes = [16, 64], strides = [1, 1]} : vector<32x64xf32> to vector<16x64xf32>
    %12 = tpu.concatenate %10, %11 in 1 : vector<16x64xf32>, vector<16x64xf32> -> vector<16x128xf32>
    %13 = vector.extract_strided_slice %8 {offsets = [0, 0], sizes = [8, 64], strides = [1, 1]} : vector<32x64xf32> to vector<8x64xf32>
    %14 = vector.extract_strided_slice %8 {offsets = [16, 0], sizes = [8, 64], strides = [1, 1]} : vector<32x64xf32> to vector<8x64xf32>
    %15 = tpu.concatenate %13, %14 in 1 : vector<8x64xf32>, vector<8x64xf32> -> vector<8x128xf32>
    %16 = vector.extract_strided_slice %9 {offsets = [0, 0], sizes = [8, 64], strides = [1, 1]} : vector<32x64xf32> to vector<8x64xf32>
    %17 = vector.extract_strided_slice %9 {offsets = [16, 0], sizes = [8, 64], strides = [1, 1]} : vector<32x64xf32> to vector<8x64xf32>
    %18 = tpu.concatenate %16, %17 in 1 : vector<8x64xf32>, vector<8x64xf32> -> vector<8x128xf32>
    %c0_5 = arith.constant 0 : index
    %c0_6 = arith.constant 0 : index
    %19 = vector.load %arg4[%c0_5, %c0_6] : memref<16x128xf32, #tpu.memory_space<vmem>>, vector<16x128xf32>
    %20 = vector.shape_cast %12 : vector<16x128xf32> to vector<1x16x128xf32>
    %21 = vector.shape_cast %19 : vector<16x128xf32> to vector<16x1x128xf32>
    %22 = vector.broadcast %20 : vector<1x16x128xf32> to vector<16x16x128xf32>
    %23 = vector.broadcast %21 : vector<16x1x128xf32> to vector<16x16x128xf32>
    %24 = arith.mulf %22, %23 : vector<16x16x128xf32>
    %25 = vector.shape_cast %24 : vector<16x16x128xf32> to vector<256x128xf32>
    %cst_7 = arith.constant dense<0.000000e+00> : vector<8x256xf32>
    %26 = tpu.matmul %15, %25, %cst_7 {dimension_numbers = #tpu.dot_dimension_numbers<[1], [1], [0], [0], [0, 0, 1, 0], [], []>} : vector<8x128xf32>, vector<256x128xf32>, vector<8x256xf32> -> vector<8x256xf32>
    %c0_8 = arith.constant 0 : index
    %c0_9 = arith.constant 0 : index
    %27 = vector.load %arg3[%c0_8, %c0_9] : memref<8x256xf32, #tpu.memory_space<vmem>>, vector<8x256xf32>
    %cst_10 = arith.constant -1.000000e+14 : f32
    %28 = vector.broadcast %cst_10 : f32 to vector<8x256xf32>
    %29 = arith.cmpf ogt, %27, %28 : vector<8x256xf32>
    %30 = arith.addf %26, %27 : vector<8x256xf32>
    %31 = arith.select %29, %30, %27 : vector<8x256xi1>, vector<8x256xf32>
    %cst_11 = arith.constant dense<0xFF800000> : vector<256xf32>
    %32 = vector.multi_reduction <maximumf>, %31, %cst_11 [0] : vector<8x256xf32> to vector<256xf32>
    %33 = vector.shape_cast %32 : vector<256xf32> to vector<1x256xf32>
    %34 = vector.broadcast %33 : vector<1x256xf32> to vector<8x256xf32>
    %35 = arith.subf %31, %34 : vector<8x256xf32>
    %36 = math.exp %35 : vector<8x256xf32>
    %cst_12 = arith.constant dense<0.000000e+00> : vector<256xf32>
    %37 = vector.multi_reduction <add>, %36, %cst_12 [0] : vector<8x256xf32> to vector<256xf32>
    %38 = vector.shape_cast %37 : vector<256xf32> to vector<1x256xf32>
    %39 = tpu.reciprocal %38 {approx = true} : vector<1x256xf32> -> vector<1x256xf32>
    %40 = vector.broadcast %39 : vector<1x256xf32> to vector<8x256xf32>
    %41 = arith.mulf %36, %40 : vector<8x256xf32>
    %cst_13 = arith.constant dense<0.000000e+00> : vector<256x128xf32>
    %42 = tpu.matmul %41, %18, %cst_13 {dimension_numbers = #tpu.dot_dimension_numbers<[0], [0], [1], [1], [0, 1, 1, 1], [], []>} : vector<8x256xf32>, vector<8x128xf32>, vector<256x128xf32> -> vector<256x128xf32>
    %43 = vector.shape_cast %42 : vector<256x128xf32> to vector<16x16x128xf32>
    %44 = vector.shape_cast %19 : vector<16x128xf32> to vector<16x1x128xf32>
    %45 = vector.broadcast %44 : vector<16x1x128xf32> to vector<16x16x128xf32>
    %46 = arith.mulf %43, %45 : vector<16x16x128xf32>
    %cst_14 = arith.constant dense<0.000000e+00> : vector<16x128xf32>
    %47 = vector.multi_reduction <add>, %46, %cst_14 [0] : vector<16x16x128xf32> to vector<16x128xf32>
    %48 = vector.extract_strided_slice %47 {offsets = [0, 0], sizes = [16, 32], strides = [1, 1]} : vector<16x128xf32> to vector<16x32xf32>
    %49 = vector.extract_strided_slice %47 {offsets = [0, 32], sizes = [16, 32], strides = [1, 1]} : vector<16x128xf32> to vector<16x32xf32>
    %50 = arith.addf %48, %49 : vector<16x32xf32>
    %51 = vector.extract_strided_slice %47 {offsets = [0, 64], sizes = [16, 32], strides = [1, 1]} : vector<16x128xf32> to vector<16x32xf32>
    %52 = vector.extract_strided_slice %47 {offsets = [0, 96], sizes = [16, 32], strides = [1, 1]} : vector<16x128xf32> to vector<16x32xf32>
    %53 = arith.addf %51, %52 : vector<16x32xf32>
    %54 = tpu.concatenate %50, %53 in 0 : vector<16x32xf32>, vector<16x32xf32> -> vector<32x32xf32>
    %55 = arith.addf %6, %54 : vector<32x32xf32>
    %cst_15 = arith.constant 0.000000e+00 : f32
    %56 = vector.broadcast %cst_15 : f32 to vector<32x32xf32>
    %57 = arith.maximumf %55, %56 : vector<32x32xf32>
    %c0_16 = arith.constant 0 : index
    %c0_17 = arith.constant 0 : index
    %58 = vector.load %arg5[%c0_16, %c0_17] : memref<32x32xf32, #tpu.memory_space<vmem>>, vector<32x32xf32>
    tpu.vector_store %arg5[%c0_16, %c0_17], %57 {strides = array<i32>} : memref<32x32xf32, #tpu.memory_space<vmem>>, vector<32x32xf32>,
    return
  }
}

</mosaic_0001>

<bundles_post_ra>
// kernel: gattnet_forward.1
= control target key start
LH: loop header
LB: loop body
LE: loop exit
PB: predicated region body
PF: predicated region fallthrough
CT: control target
= control target key end

     0   :  { %v1209_v4 = vmov 0.0   ;;  %s1544_s0 = inlined_call_operand.vmem [shape: f32[32,32], index: 0, kind: input, shape index: {}]   ;;  %s1545_s1 = inlined_call_operand.vmem [shape: f32[32,224], index: 1, kind: input, shape index: {}]   ;;  %s1546_s2 = inlined_call_operand.vmem [shape: f32[1,224], index: 2, kind: input, shape index: {}]   ;;  %s1547_s3 = inlined_call_operand.vmem [shape: f32[8,256], index: 3, kind: input, shape index: {}]   ;;  %s1548_s4 = inlined_call_operand.vmem [shape: f32[16,128], index: 4, kind: input, shape index: {}]   ;;  %s1549_s5 = inlined_call_operand.hbm [shape: f32[32,32], index: 5, kind: output, shape index: {}]  }
   0x1   :  { %v32_v0 = vld [vmem:[%s1545_s1 + $0x38] sm:$0xff]  ;;  %v31_v1 = vld [vmem:[%s1545_s1 + $0x30] sm:$0xff]  ;;  %v30_v2 = vld [vmem:[%s1545_s1 + $0x28] sm:$0xff]  ;;  %122 = vmatprep.mubr.f32.mxu1 %v1209_v4 }
   0x2   :  { %82 = vmatprep.subr.mxu1 %v32_v0  ;;  %v29_v3 = vld [vmem:[%s1545_s1 + $0x20] sm:$0xff]  ;;  %v28_v5 = vld [vmem:[%s1545_s1 + $0x18] sm:$0xff]  ;;  %v27_v6 = vld [vmem:[%s1545_s1 + $0x10] sm:$0xff] }
   0x3   :  { %83 = vmatpush1.msra.mxu1 %v31_v1  ;;  %v26_v7 = vld [vmem:[%s1545_s1 + $0x8] sm:$0xff] }
   0x4   :  { %84 = vmatprep.subr.mxu1 %v30_v2 }
   0x5   :  { %85 = vmatpush1.msra.mxu1 %v29_v3 }
   0x6   :  { %10 = vsyncpa [#allocation3], 0  ;;  %86 = vmatprep.subr.mxu1 %v28_v5  ;;  %v25_v8 = vld [vmem:[%s1545_s1] sm:$0xff]  ;;  %vm45_vm0 = vcmask 261120   ;;  %v22_v10 = vld [vmem:[%s1544_s0 + $0x8] sm:$0xff]  ;;  %v35_v13 = vlaneseq  ;;  %s1210_s18 = smov 96  }
   0x7   :  { %87 = vmatpush1.msra.mxu1 %v27_v6  ;;  %v21_v9 = vld [vmem:[%s1544_s0] sm:$0xff]  ;;  %v23_v11 = vld [vmem:[%s1544_s0 + $0x10] sm:$0xff]  ;;  %v24_v12 = vld [vmem:[%s1544_s0 + $0x18] sm:$0xff]  ;;  %s1211_s0 = smov 32   ;;  %v1212_v36 = vmov 1966171168  }
   0x8   :  { %88 = vmatprep.subr.mxu1 %v26_v7  ;;  %v36_v14 = vshrl.u32 %v35_v13, 7  ;;  %v33_v16 = vld [vmem:[%s1546_s2] sm:$0x3]  ;;  %v193_v37 = vunpack.c.l.s4 %v1212_v36  ;;  %v188_v39 = vld [vmem:[%s1548_s4 + $0x8] sm:$0xff]  ;;  %vm161_vm1 = vcmask 523264   ;;  %vm176_vm2 = vcmask 785408  }
   0x9   :  { %89 = vmatpush1.msra.mxu1 %v25_v8  ;;  %v1317_v40 = vld [vmem:[%s1548_s4] sm:$0xff]  ;;  %v240_v42 = vcombine.high %v188_v39, %v188_v39  ;;  %vm576_vm5 = vcmask 64512   ;;  %s1214_s25 = smov [#allocation2]  }
   0xa   :  { %1006 = vmatmul.mubr.msk.f32.vlgmr.msra.gmra.mxu1 %vm45_vm0, %v21_v9  ;;  %v1287_v15 = vsub.s32 0, %v36_v14  ;;  %v41_v22 = vsub.s32 1, %v36_v14  ;;  %v194_v38 = vunpack.c.0.s8 %v193_v37  ;;  %v191_v43 = vcombine.high %v1317_v40, %v1317_v40  ;;  %s995_s26 = sshll.u32 %s1214_s25, 4  ;;  %s996_s26 = int_to_ptr.vmem [resolvable:$true] %s995_s26 }
   0xb   :  { %128 = vmatprep.mubr.f32.mxu1 %v1209_v4  ;;  %s1187_s27 = scalar_lea.vmem %s996_s26, 512  ;;  %p1192_p1 = scmp.lt.s32.totalorder %s996_s26, %s996_s26 }
   0xc   :  { %v38_v17 = vrot.slane %v33_v16, %v1287_v15  ;;  %v42_v26 = vrot.slane %v33_v16, %v41_v22  ;;  %v1319_v41 = vsub.s32 %v194_v38, %v36_v14  ;;  %p1188_p0 = scmp.ne.s32.totalorder %s996_s26, %s1187_s27  ;;  %p1193_p2 = scmp.lt.s32.totalorder %s1187_s27, %s1187_s27 }
   0xe   :  { %1007 = vmatmul.mubr.msk.f32.gmra.mxu1 %vm45_vm0, %v22_v10  ;;  %v254_v44 = vrot.slane %v240_v42, %v1319_v41  ;;  %v205_v45 = vrot.slane %v191_v43, %v1319_v41  ;;  %p1194_p3 = por %p1193_p2, %p1192_p1 }
   0xf   :  { %133 = vmatprep.mubr.f32.mxu1 %v1209_v4 }
  0x10   :  { %v256_v46 = vcombine.high %v254_v44, %v254_v44  ;;  %v207_v47 = vcombine.high %v205_v45, %v205_v45  ;;  %v270_v55 = vrot.slane %v254_v44, %v1319_v41  ;;  %v221_v62 = vrot.slane %v205_v45, %v1319_v41  ;;  %p1195_p4 = pnand %p1194_p3, %p1188_p0 }
  0x12   :  { %1008 = vmatmul.mubr.msk.f32.gmra.mxu1 %vm45_vm0, %v23_v11  ;;  %v284_v49 = vrot.slane %v256_v46, %v1319_v41  ;;  %v235_v50 = vrot.slane %v207_v47, %v1319_v41  ;;  %v286_v1 = vcombine.high %v270_v55, %v270_v55  ;;  %v237_v8 = vcombine.high %v221_v62, %v221_v62 }
  0x13   :  { %139 = vmatprep.mubr.f32.mxu1 %v1209_v4  ;;  %v1385_v36 = vrot.slane %v270_v55, %v1287_v15 }
  0x14   :  { %v288_v53 = vcombine.high %v284_v49, %v284_v49  ;;  %v239_v54 = vcombine.high %v235_v50, %v235_v50  ;;  %v1348_v9 = vrot.slane %v286_v1, %v1287_v15 }
  0x16   :  { %1009 = vmatmul.mubr.msk.f32.gmra.mxu1 %vm45_vm0, %v24_v12  ;;  %v1329_v58 = vrot.slane %v288_v53, %v1287_v15  ;;  %v1332_v59 = vrot.slane %v239_v54, %v1287_v15 }
  0xca   :  { %v124_v18 = vpop.f32.mrf.mxu1 }
  0xcb   :  { %v1293_v19 = vadd.f32 %v124_v18, %v38_v17 }
  0xcc   :  { %v126_v20 = vpop.f32.mrf.mxu1 }
  0xcd   :  { %147 = vrot.lane.b32.xlu1 %v1293_v19, %s1210_s18  ;;  %v127_v31 = vadd.f32 %v126_v20, %v42_v26  ;;  %v1361_v20 = vrot.slane %v237_v8, %v1287_v15 }
  0xce   :  { %v130_v21 = vpop.f32.mrf.mxu1 }
  0xcf   :  { %v1297_v23 = vadd.f32 %v130_v21, %v38_v17  ;;  %v1167_v35 = vpack.i.bf16 %v127_v31, %v1293_v19 }
  0xd0   :  { %v132_v24 = vpop.f32.mrf.mxu1 }
  0xd1   :  { %149 = vrot.lane.b32.xlu0 %v1297_v23, %s1210_s18  ;;  %v1368_v24 = vrot.slane %v284_v49, %v1287_v15 }
  0xd2   :  { %v135_v25 = vpop.f32.mrf.mxu1 }
  0xd3   :  { %v1301_v27 = vadd.f32 %v135_v25, %v38_v17  ;;  %v247_v25 = vrot.slane %v188_v39, %v1319_v41 }
  0xd4   :  { %v137_v28 = vpop.f32.mrf.mxu1 }
  0xd5   :  { %v138_v29 = vadd.f32 %v137_v28, %v42_v26  ;;  %155 = vrot.lane.b32.xlu1 %v1301_v27, %s1211_s0 }
  0xd6   :  { %v141_v30 = vpop.f32.mrf.mxu1 }
  0xd7   :  { %v1172_v32 = vpack.i.bf16 %v138_v29, %v1301_v27  ;;  %v1305_v33 = vadd.f32 %v141_v30, %v38_v17  ;;  %v198_v30 = vrot.slane %v1317_v40, %v1319_v41  ;;  %v1393_v40 = vrot.slane %v221_v62, %v1287_v15 }
  0xd8   :  { %v143_v34 = vpop.f32.mrf.mxu1 }
  0xd9   :  { %157 = vrot.lane.b32.xlu0 %v1305_v33, %s1211_s0  ;;  %1173 = vrot.lane.b32.xlu1 %v1172_v32, %s1210_s18 }
  0xdd   :  { %1168 = vrot.lane.b32.xlu0 %v1167_v35, %s1211_s0  ;;  %183 = vrot.lane.b32.xlu1 %v138_v29, %s1211_s0  ;;  %v1376_v29 = vrot.slane %v235_v50, %v1287_v15  ;;  %v206_v35 = vcombine.high %v198_v30, %v198_v30 }
  0xdf   :  { %v228_v42 = vrot.slane %v206_v35, %v1319_v41 }
  0xe1   :  { %180 = vrot.lane.b32.xlu0 %v127_v31, %s1210_s18  ;;  %v255_v31 = vcombine.high %v247_v25, %v247_v25  ;;  %v238_v46 = vcombine.high %v228_v42, %v228_v42 }
  0xe3   :  { %v277_v37 = vrot.slane %v255_v31, %v1319_v41 }
  0xe5   :  { %v287_v43 = vcombine.high %v277_v37, %v277_v37 }
  0xe7   :  { %v1401_v47 = vrot.slane %v287_v43, %v1287_v15 }
 0x13f   :  { %v148_v48 = vpop.permute.xlu1 %147 }
 0x143   :  { %v150_v51 = vpop.permute.xlu0 %149 }
 0x147   :  { %v156_v52 = vpop.permute.xlu1 %155 }
 0x148   :  { %v1335_v60 = vsel %vm161_vm1, %v148_v48, %v156_v52  ;;  %v263_v48 = vrot.slane %v247_v25, %v1319_v41  ;;  %v214_v52 = vrot.slane %v198_v30, %v1319_v41 }
 0x149   :  { %v399_v5 = vmul.f32 %v1329_v58, %v1335_v60  ;;  %v383_v10 = vmul.f32 %v1332_v59, %v1335_v60  ;;  %v397_v22 = vmul.f32 %v1348_v9, %v1335_v60  ;;  %v381_v26 = vmul.f32 %v1361_v20, %v1335_v60 }
 0x14a   :  { %v395_v34 = vmul.f32 %v1368_v24, %v1335_v60  ;;  %v379_v38 = vmul.f32 %v1376_v29, %v1335_v60  ;;  %v393_v45 = vmul.f32 %v1385_v36, %v1335_v60  ;;  %v377_v49 = vmul.f32 %v1393_v40, %v1335_v60 }
 0x14b   :  { %v158_v56 = vpop.permute.xlu0 %157  ;;  %v1174_v57 = vpop.permute.xlu1 %1173  ;;  %v285_v53 = vcombine.high %v263_v48, %v263_v48  ;;  %v391_v55 = vmul.f32 %v1401_v47, %v1335_v60  ;;  %v1445_v8 = vrot.slane %v263_v48, %v1287_v15 }
 0x14c   :  { %v1338_v61 = vsel %vm161_vm1, %v150_v51, %v158_v56  ;;  %v1176_v2 = vunpack.i.h.bf16 %v1174_v57  ;;  %v1175_v3 = vunpack.i.l.bf16 %v1174_v57  ;;  %v1409_v51 = vrot.slane %v238_v46, %v1287_v15 }
 0x14d   :  { %v400_v63 = vmul.f32 %v1329_v58, %v1338_v61  ;;  %v384_v0 = vmul.f32 %v1332_v59, %v1338_v61  ;;  %v398_v17 = vmul.f32 %v1348_v9, %v1338_v61  ;;  %v382_v21 = vmul.f32 %v1361_v20, %v1338_v61 }
 0x14e   :  { %v177_v12 = vsel %vm176_vm2, %v1175_v3, %v1176_v2  ;;  %v396_v28 = vmul.f32 %v1368_v24, %v1338_v61  ;;  %v380_v32 = vmul.f32 %v1376_v29, %v1338_v61  ;;  %v394_v39 = vmul.f32 %v1385_v36, %v1338_v61 }
 0x14f   :  { %1042 = vmatprep.subr.mxu1 %v400_v63  ;;  %v1169_v4 = vpop.permute.xlu0 %1168  ;;  %v184_v13 = vpop.permute.xlu1 %183  ;;  %v378_v44 = vmul.f32 %v1393_v40, %v1338_v61  ;;  %v392_v50 = vmul.f32 %v1401_v47, %v1338_v61  ;;  %v376_v54 = vmul.f32 %v1409_v51, %v1338_v61  ;;  %v236_v56 = vcombine.high %v214_v52, %v214_v52 }
 0x150   :  { %v1171_v6 = vunpack.i.h.bf16 %v1169_v4  ;;  %v1170_v7 = vunpack.i.l.bf16 %v1169_v4  ;;  %1043 = vmatpush3.xpose.msra.mxu1 %v384_v0  ;;  %v1417_v57 = vrot.slane %v285_v53, %v1287_v15  ;;  %v375_v62 = vmul.f32 %v1409_v51, %v1335_v60 }
 0x151   :  { %1044 = vmatprep.subr.mxu1 %v399_v5  ;;  %v1424_v63 = vrot.slane %v236_v56, %v1287_v15  ;;  %v1431_v2 = vrot.slane %v277_v37, %v1287_v15  ;;  %v1438_v5 = vrot.slane %v228_v42, %v1287_v15 }
 0x152   :  { %v169_v11 = vsel %vm45_vm0, %v1170_v7, %v1171_v6  ;;  %v390_v41 = vmul.f32 %v1417_v57, %v1338_v61  ;;  %v389_v1 = vmul.f32 %v1417_v57, %v1335_v60 }
 0x153   :  { %v181_v14 = vpop.permute.xlu0 %180  ;;  %v1354_v16 = vsel %vm161_vm1, %v169_v11, %v177_v12  ;;  %v374_v0 = vmul.f32 %v1424_v63, %v1338_v61  ;;  %v373_v3 = vmul.f32 %v1424_v63, %v1335_v60  ;;  %v388_v4 = vmul.f32 %v1431_v2, %v1338_v61 }
 0x154   :  { %1045 = vmatpush3.xpose.msra.mxu1 %v383_v10  ;;  %1074 = vmatprep.mubr.f32.mxu1 %v1354_v16  ;;  %v186_v18 = vsel %vm161_vm1, %v181_v14, %v184_v13  ;;  %v372_v6 = vmul.f32 %v1438_v5, %v1338_v61  ;;  %v387_v7 = vmul.f32 %v1431_v2, %v1335_v60 }
 0x155   :  { %1046 = vmatprep.subr.mxu1 %v398_v17  ;;  %1109 = vmatprep.subr.mxu0 %v186_v18  ;;  %v371_v10 = vmul.f32 %v1438_v5, %v1335_v60  ;;  %v386_v11 = vmul.f32 %v1445_v8, %v1338_v61  ;;  %v1452_v12 = vrot.slane %v214_v52, %v1287_v15  ;;  %v401_v15 = vld [vmem:[%s1547_s3] sm:$0xff] }
 0x156   :  { %1110 = vmatpush3.msra.mxu0 %v186_v18  ;;  %v385_v14 = vmul.f32 %v1445_v8, %v1335_v60  ;;  %v402_v18 = vld [vmem:[%s1547_s3 + $0x8] sm:$0xff]  ;;  %vm403_vm3 = vcmp.gt.f32.partialorder %v401_v15, -1e+14  ;;  %s1213_s3 = smov 64  }
 0x157   :  { %v370_v13 = vmul.f32 %v1452_v12, %v1338_v61  ;;  %v369_v17 = vmul.f32 %v1452_v12, %v1335_v60  ;;  %vm404_vm4 = vcmp.gt.f32.partialorder %v402_v18, -1e+14 }
 0x158   :  { %1047 = vmatpush3.xpose.msra.mxu1 %v382_v21 }
 0x159   :  { %1048 = vmatprep.subr.mxu1 %v397_v22 }
 0x15c   :  { %1049 = vmatpush3.xpose.msra.mxu1 %v381_v26 }
 0x15d   :  { %1050 = vmatprep.subr.mxu1 %v396_v28 }
 0x160   :  { %1051 = vmatpush3.xpose.msra.mxu1 %v380_v32 }
 0x161   :  { %1052 = vmatprep.subr.mxu1 %v395_v34 }
 0x164   :  { %1053 = vmatpush3.xpose.msra.mxu1 %v379_v38 }
 0x165   :  { %1054 = vmatprep.subr.mxu1 %v394_v39 }
 0x168   :  { %1055 = vmatpush3.xpose.msra.mxu1 %v378_v44 }
 0x169   :  { %1056 = vmatprep.subr.mxu1 %v393_v45 }
 0x16c   :  { %1057 = vmatpush3.xpose.msra.mxu1 %v377_v49 }
 0x16d   :  { %1058 = vmatprep.subr.mxu1 %v392_v50 }
 0x170   :  { %1059 = vmatpush3.xpose.msra.mxu1 %v376_v54 }
 0x171   :  { %1060 = vmatprep.subr.mxu1 %v391_v55 }
 0x174   :  { %1061 = vmatpush3.xpose.msra.mxu1 %v375_v62 }
 0x175   :  { %1062 = vmatprep.subr.mxu1 %v390_v41 }
 0x178   :  { %1063 = vmatpush3.xpose.msra.mxu1 %v374_v0 }
 0x179   :  { %1064 = vmatprep.subr.mxu1 %v389_v1 }
 0x17c   :  { %1065 = vmatpush3.xpose.msra.mxu1 %v373_v3 }
 0x17d   :  { %1066 = vmatprep.subr.mxu1 %v388_v4 }
 0x180   :  { %1067 = vmatpush3.xpose.msra.mxu1 %v372_v6 }
 0x181   :  { %1068 = vmatprep.subr.mxu1 %v387_v7 }
 0x184   :  { %1069 = vmatpush3.xpose.msra.mxu1 %v371_v10 }
 0x185   :  { %1070 = vmatprep.subr.mxu1 %v386_v11 }
 0x188   :  { %1071 = vmatpush3.xpose.msra.mxu1 %v370_v13 }
 0x189   :  { %1072 = vmatprep.subr.mxu1 %v385_v14 }
 0x18c   :  { %1073 = vmatpush3.xpose.msra.mxu1 %v369_v17 }
 0x18f   :  { %1075 = vmatmul.mubr.f32.vlgmr.msra.gmra.mxu1 %v1354_v16 }
 0x24f   :  { %v471_v61 = vpop.f32.mrf.mxu1 }
 0x250   :  { %v472_v21 = vadd.f32 %v471_v61, %v401_v15 }
 0x251   :  { %v473_v22 = vpop.f32.mrf.mxu1 }
 0x252   :  { %v476_v25 = vsel %vm403_vm3, %v472_v21, %v401_v15  ;;  %v474_v26 = vadd.f32 %v473_v22, %v402_v18 }
 0x253   :  { %v478_v28 = vrot.slane %v476_v25, 4 }
 0x254   :  { %v477_v60 = vsel %vm404_vm4, %v474_v26, %v402_v18 }
 0x255   :  { %v479_v30 = vmax.f32 %v476_v25, %v478_v28  ;;  %v484_v31 = vrot.slane %v477_v60, 4 }
 0x257   :  { %v480_v16 = vrot.slane %v479_v30, 2  ;;  %v485_v32 = vmax.f32 %v477_v60, %v484_v31 }
 0x259   :  { %v481_v34 = vmax.f32 %v479_v30, %v480_v16  ;;  %v486_v35 = vrot.slane %v485_v32, 2 }
 0x25b   :  { %v482_v37 = vrot.slane %v481_v34, 1  ;;  %v487_v38 = vmax.f32 %v485_v32, %v486_v35 }
 0x25d   :  { %v483_v39 = vmax.f32 %v481_v34, %v482_v37  ;;  %v488_v42 = vrot.slane %v487_v38, 1 }
 0x25f   :  { %v490_v43 = vsub.f32 %v476_v25, %v483_v39  ;;  %v489_v44 = vmax.f32 %v487_v38, %v488_v42 }
 0x261   :  { %v492_v45 = vmul.f32 1.442695, %v490_v43  ;;  %v491_v46 = vsub.f32 %v477_v60, %v489_v44 }
 0x263   :  { %1179 = vpow2.f32 %v492_v45  ;;  %v494_v48 = vmul.f32 1.442695, %v491_v46 }
 0x265   :  { %1181 = vpow2.f32 %v494_v48 }
 0x270   :  { %v1180_v49 = vpop.eup %1179 }
 0x271   :  { %v496_v50 = vrot.slane %v1180_v49, 4 }
 0x272   :  { %v1182_v52 = vpop.eup %1181 }
 0x273   :  { %v497_v53 = vadd.f32 %v1180_v49, %v496_v50  ;;  %v502_v54 = vrot.slane %v1182_v52, 4 }
 0x275   :  { %v498_v55 = vrot.slane %v497_v53, 2  ;;  %v503_v56 = vadd.f32 %v1182_v52, %v502_v54 }
 0x277   :  { %v499_v62 = vadd.f32 %v498_v55, %v497_v53  ;;  %v504_v41 = vrot.slane %v503_v56, 2 }
 0x279   :  { %v500_v0 = vrot.slane %v499_v62, 1  ;;  %v505_v1 = vadd.f32 %v504_v41, %v503_v56 }
 0x27b   :  { %v501_v3 = vadd.f32 %v500_v0, %v499_v62  ;;  %v506_v4 = vrot.slane %v505_v1, 1 }
 0x27d   :  { %1183 = vrcp.f32 %v501_v3  ;;  %v507_v6 = vadd.f32 %v506_v4, %v505_v1 }
 0x27f   :  { %1185 = vrcp.f32 %v507_v6 }
 0x28a   :  { %v1184_v7 = vpop.eup %1183 }
 0x28b   :  { %v510_v10 = vmul.f32 %v1184_v7, %v1180_v49 }
 0x28c   :  { %v1186_v11 = vpop.eup %1185 }
 0x28d   :  { %512 = vxpose.xlu0.b32.start.end [1/1] (short) %v510_v10, 128  ;;  %v511_v13 = vmul.f32 %v1186_v11, %v1182_v52 }
 0x28f   :  { %544 = vxpose.xlu1.b32.start.end [1/1] (short) %v511_v13, 128 }
 0x309   :  { %v528_v14 = vpop.trf.xlu0 }
 0x30a   :  { %1111 = vmatprep.mubr.msk.f32.mxu0 %vm576_vm5, %v528_v14 }
 0x30b   :  { %v560_v17 = vpop.trf.xlu1 }
 0x30d   :  { %v529_v15 = vpop.trf.xlu0 }
 0x30e   :  { %1112 = vmatmul.mubr.msk.f32.vlgmr.msra.gmra.mxu0 %vm576_vm5, %v529_v15 }
 0x30f   :  { %v561_v18 = vpop.trf.xlu1 }
 0x311   :  { %v530_v61 = vpop.trf.xlu0 }
 0x312   :  { %1114 = vmatprep.mubr.msk.f32.mxu0 %vm576_vm5, %v530_v61 }
 0x313   :  { %v562_v22 = vpop.trf.xlu1 }
 0x315   :  { %v531_v21 = vpop.trf.xlu0 }
 0x316   :  { %1115 = vmatmul.mubr.msk.f32.gmra.mxu0 %vm576_vm5, %v531_v21 }
 0x317   :  { %v563_v26 = vpop.trf.xlu1 }
 0x319   :  { %v532_v25 = vpop.trf.xlu0 }
 0x31a   :  { %1117 = vmatprep.mubr.msk.f32.mxu0 %vm576_vm5, %v532_v25 }
 0x31b   :  { %v564_v30 = vpop.trf.xlu1 }
 0x31d   :  { %v533_v28 = vpop.trf.xlu0 }
 0x31e   :  { %1118 = vmatmul.mubr.msk.f32.gmra.mxu0 %vm576_vm5, %v533_v28 }
 0x31f   :  { %v565_v16 = vpop.trf.xlu1 }
 0x321   :  { %v534_v60 = vpop.trf.xlu0 }
 0x322   :  { %1120 = vmatprep.mubr.msk.f32.mxu0 %vm576_vm5, %v534_v60 }
 0x323   :  { %v566_v35 = vpop.trf.xlu1 }
 0x325   :  { %v535_v31 = vpop.trf.xlu0 }
 0x326   :  { %1121 = vmatmul.mubr.msk.f32.gmra.mxu0 %vm576_vm5, %v535_v31 }
 0x327   :  { %v567_v38 = vpop.trf.xlu1 }
 0x329   :  { %v536_v32 = vpop.trf.xlu0 }
 0x32a   :  { %1123 = vmatprep.mubr.msk.f32.mxu0 %vm576_vm5, %v536_v32 }
 0x32b   :  { %v568_v43 = vpop.trf.xlu1 }
 0x32d   :  { %v537_v34 = vpop.trf.xlu0 }
 0x32e   :  { %1124 = vmatmul.mubr.msk.f32.gmra.mxu0 %vm576_vm5, %v537_v34 }
 0x32f   :  { %v569_v45 = vpop.trf.xlu1 }
 0x331   :  { %v538_v37 = vpop.trf.xlu0 }
 0x332   :  { %1126 = vmatprep.mubr.msk.f32.mxu0 %vm576_vm5, %v538_v37 }
 0x333   :  { %v570_v49 = vpop.trf.xlu1 }
 0x335   :  { %v539_v39 = vpop.trf.xlu0 }
 0x336   :  { %1127 = vmatmul.mubr.msk.f32.gmra.mxu0 %vm576_vm5, %v539_v39 }
 0x337   :  { %v571_v50 = vpop.trf.xlu1 }
 0x339   :  { %v540_v42 = vpop.trf.xlu0 }
 0x33a   :  { %1129 = vmatprep.mubr.msk.f32.mxu0 %vm576_vm5, %v540_v42 }
 0x33b   :  { %v572_v52 = vpop.trf.xlu1 }
 0x33d   :  { %v541_v44 = vpop.trf.xlu0 }
 0x33e   :  { %1130 = vmatmul.mubr.msk.f32.gmra.mxu0 %vm576_vm5, %v541_v44 }
 0x33f   :  { %v573_v53 = vpop.trf.xlu1 }
 0x341   :  { %v542_v46 = vpop.trf.xlu0 }
 0x342   :  { %1132 = vmatprep.mubr.msk.f32.mxu0 %vm576_vm5, %v542_v46 }
 0x343   :  { %v574_v54 = vpop.trf.xlu1 }
 0x345   :  { %v543_v48 = vpop.trf.xlu0 }
 0x346   :  { %1133 = vmatmul.mubr.msk.f32.gmra.mxu0 %vm576_vm5, %v543_v48 }
 0x347   :  { %1135 = vmatprep.mubr.msk.f32.mxu0 %vm576_vm5, %v560_v17  ;;  %v575_v55 = vpop.trf.xlu1 }
 0x34a   :  { %1136 = vmatmul.mubr.msk.f32.gmra.mxu0 %vm576_vm5, %v561_v18 }
 0x34b   :  { %1138 = vmatprep.mubr.msk.f32.mxu0 %vm576_vm5, %v562_v22 }
 0x34e   :  { %1139 = vmatmul.mubr.msk.f32.gmra.mxu0 %vm576_vm5, %v563_v26 }
 0x34f   :  { %1141 = vmatprep.mubr.msk.f32.mxu0 %vm576_vm5, %v564_v30 }
 0x352   :  { %1142 = vmatmul.mubr.msk.f32.gmra.mxu0 %vm576_vm5, %v565_v16 }
 0x353   :  { %1144 = vmatprep.mubr.msk.f32.mxu0 %vm576_vm5, %v566_v35 }
 0x356   :  { %1145 = vmatmul.mubr.msk.f32.gmra.mxu0 %vm576_vm5, %v567_v38 }
 0x357   :  { %1147 = vmatprep.mubr.msk.f32.mxu0 %vm576_vm5, %v568_v43 }
 0x35a   :  { %1148 = vmatmul.mubr.msk.f32.gmra.mxu0 %vm576_vm5, %v569_v45 }
 0x35b   :  { %1150 = vmatprep.mubr.msk.f32.mxu0 %vm576_vm5, %v570_v49 }
 0x35e   :  { %1151 = vmatmul.mubr.msk.f32.gmra.mxu0 %vm576_vm5, %v571_v50 }
 0x35f   :  { %1153 = vmatprep.mubr.msk.f32.mxu0 %vm576_vm5, %v572_v52 }
 0x362   :  { %1154 = vmatmul.mubr.msk.f32.gmra.mxu0 %vm576_vm5, %v573_v53 }
 0x363   :  { %1156 = vmatprep.mubr.msk.f32.mxu0 %vm576_vm5, %v574_v54 }
 0x366   :  { %1157 = vmatmul.mubr.msk.f32.gmra.mxu0 %vm576_vm5, %v575_v55 }
 0x3ce   :  { %v1113_v56 = vpop.f32.mrf.mxu0 }
 0x3cf   :  { %v899_v22 = vmul.f32 %v1113_v56, %v1452_v12 }
 0x3d0   :  { %v739_v62 = vpop.f32.mrf.mxu0 }
 0x3d1   :  { %v898_v60 = vmul.f32 %v739_v62, %v1452_v12 }
 0x3d6   :  { %v1116_v41 = vpop.f32.mrf.mxu0 }
 0x3d7   :  { %v901_v61 = vmul.f32 %v1116_v41, %v1438_v5 }
 0x3d8   :  { %v749_v0 = vpop.f32.mrf.mxu0 }
 0x3d9   :  { %v900_v25 = vmul.f32 %v749_v0, %v1438_v5  ;;  %v945_v30 = vadd.f32 %v901_v61, %v899_v22 }
 0x3db   :  { %v930_v34 = vadd.f32 %v900_v25, %v898_v60 }
 0x3de   :  { %v1119_v1 = vpop.f32.mrf.mxu0 }
 0x3df   :  { %v903_v26 = vmul.f32 %v1119_v1, %v1424_v63 }
 0x3e0   :  { %v759_v3 = vpop.f32.mrf.mxu0 }
 0x3e1   :  { %v902_v31 = vmul.f32 %v759_v3, %v1424_v63  ;;  %v946_v35 = vadd.f32 %v945_v30, %v903_v26 }
 0x3e3   :  { %v931_v42 = vadd.f32 %v930_v34, %v902_v31 }
 0x3e6   :  { %v1122_v4 = vpop.f32.mrf.mxu0 }
 0x3e7   :  { %v905_v16 = vmul.f32 %v1122_v4, %v1409_v51 }
 0x3e8   :  { %v769_v6 = vpop.f32.mrf.mxu0 }
 0x3e9   :  { %v904_v37 = vmul.f32 %v769_v6, %v1409_v51  ;;  %v947_v5 = vadd.f32 %v946_v35, %v905_v16 }
 0x3eb   :  { %v932_v45 = vadd.f32 %v931_v42, %v904_v37 }
 0x3ee   :  { %v1125_v7 = vpop.f32.mrf.mxu0 }
 0x3ef   :  { %v907_v38 = vmul.f32 %v1125_v7, %v1393_v40 }
 0x3f0   :  { %v779_v10 = vpop.f32.mrf.mxu0 }
 0x3f1   :  { %v906_v43 = vmul.f32 %v779_v10, %v1393_v40  ;;  %v948_v46 = vadd.f32 %v947_v5, %v907_v38 }
 0x3f3   :  { %v933_v50 = vadd.f32 %v932_v45, %v906_v43 }
 0x3f6   :  { %v1128_v11 = vpop.f32.mrf.mxu0 }
 0x3f7   :  { %v909_v44 = vmul.f32 %v1128_v11, %v1376_v29 }
 0x3f8   :  { %v789_v13 = vpop.f32.mrf.mxu0 }
 0x3f9   :  { %v908_v63 = vmul.f32 %v789_v13, %v1376_v29  ;;  %v949_v52 = vadd.f32 %v948_v46, %v909_v44 }
 0x3fb   :  { %v934_v55 = vadd.f32 %v933_v50, %v908_v63 }
 0x3fe   :  { %v1131_v14 = vpop.f32.mrf.mxu0 }
 0x3ff   :  { %v911_v48 = vmul.f32 %v1131_v14, %v1361_v20 }
 0x400   :  { %v799_v17 = vpop.f32.mrf.mxu0 }
 0x401   :  { %v910_v51 = vmul.f32 %v799_v17, %v1361_v20  ;;  %v950_v56 = vadd.f32 %v949_v52, %v911_v48 }
 0x403   :  { %v935_v0 = vadd.f32 %v934_v55, %v910_v51 }
 0x406   :  { %v1134_v15 = vpop.f32.mrf.mxu0 }
 0x407   :  { %v913_v53 = vmul.f32 %v1134_v15, %v1332_v59 }
 0x408   :  { %v809_v18 = vpop.f32.mrf.mxu0 }
 0x409   :  { %v912_v40 = vmul.f32 %v809_v18, %v1332_v59  ;;  %v951_v1 = vadd.f32 %v950_v56, %v913_v53 }
 0x40a   :  { %v1137_v21 = vpop.f32.mrf.mxu0 }
 0x40b   :  { %v915_v62 = vmul.f32 %v1137_v21, %v1445_v8  ;;  %v936_v6 = vadd.f32 %v935_v0, %v912_v40 }
 0x40c   :  { %v819_v28 = vpop.f32.mrf.mxu0 }
 0x40d   :  { %v914_v29 = vmul.f32 %v819_v28, %v1445_v8  ;;  %v952_v7 = vadd.f32 %v951_v1, %v915_v62 }
 0x40e   :  { %v1140_v32 = vpop.f32.mrf.mxu0 }
 0x40f   :  { %v917_v3 = vmul.f32 %v1140_v32, %v1431_v2  ;;  %v937_v13 = vadd.f32 %v936_v6, %v914_v29 }
 0x410   :  { %v829_v39 = vpop.f32.mrf.mxu0 }
 0x411   :  { %v916_v20 = vmul.f32 %v829_v39, %v1431_v2  ;;  %v953_v14 = vadd.f32 %v952_v7, %v917_v3 }
 0x412   :  { %v1143_v12 = vpop.f32.mrf.mxu0 }
 0x413   :  { %v919_v10 = vmul.f32 %v1143_v12, %v1417_v57  ;;  %v938_v18 = vadd.f32 %v937_v13, %v916_v20 }
 0x414   :  { %v839_v49 = vpop.f32.mrf.mxu0 }
 0x415   :  { %v918_v59 = vmul.f32 %v839_v49, %v1417_v57  ;;  %v954_v61 = vadd.f32 %v953_v14, %v919_v10 }
 0x416   :  { %v1146_v54 = vpop.f32.mrf.mxu0 }
 0x417   :  { %v921_v17 = vmul.f32 %v1146_v54, %v1401_v47  ;;  %v939_v25 = vadd.f32 %v938_v18, %v918_v59 }
 0x418   :  { %v849_v41 = vpop.f32.mrf.mxu0 }
 0x419   :  { %v920_v8 = vmul.f32 %v849_v41, %v1401_v47  ;;  %v955_v26 = vadd.f32 %v954_v61, %v921_v17 }
 0x41a   :  { %v1149_v4 = vpop.f32.mrf.mxu0 }
 0x41b   :  { %v923_v21 = vmul.f32 %v1149_v4, %v1385_v36  ;;  %v940_v30 = vadd.f32 %v939_v25, %v920_v8 }
 0x41c   :  { %v859_v11 = vpop.f32.mrf.mxu0 }
 0x41d   :  { %v922_v2 = vmul.f32 %v859_v11, %v1385_v36  ;;  %v956_v31 = vadd.f32 %v955_v26, %v923_v21 }
 0x41e   :  { %v1152_v15 = vpop.f32.mrf.mxu0 }
 0x41f   :  { %v925_v28 = vmul.f32 %v1152_v15, %v1368_v24  ;;  %v941_v34 = vadd.f32 %v940_v30, %v922_v2 }
 0x420   :  { %v869_v22 = vpop.f32.mrf.mxu0 }
 0x421   :  { %v924_v57 = vmul.f32 %v869_v22, %v1368_v24  ;;  %v957_v35 = vadd.f32 %v956_v31, %v925_v28 }
 0x422   :  { %v1155_v60 = vpop.f32.mrf.mxu0 }
 0x423   :  { %v927_v16 = vmul.f32 %v1155_v60, %v1348_v9  ;;  %v942_v38 = vadd.f32 %v941_v34, %v924_v57 }
 0x424   :  { %v879_v32 = vpop.f32.mrf.mxu0 }
 0x425   :  { %v926_v47 = vmul.f32 %v879_v32, %v1348_v9  ;;  %v958_v39 = vadd.f32 %v957_v35, %v927_v16 }
 0x426   :  { %v1158_v37 = vpop.f32.mrf.mxu0 }
 0x427   :  { %v929_v42 = vmul.f32 %v1158_v37, %v1329_v58  ;;  %v943_v5 = vadd.f32 %v942_v38, %v926_v47 }
 0x428   :  { %v889_v36 = vpop.f32.mrf.mxu0 }
 0x429   :  { %v959_v43 = vadd.f32 %v958_v39, %v929_v42  ;;  %v928_v44 = vmul.f32 %v889_v36, %v1329_v58 }
 0x42b   :  { %v944_v12 = vadd.f32 %v943_v5, %v928_v44  ;;  %964 = vrot.lane.b32.xlu1 %v959_v43, %s1210_s18 }
 0x42d   :  { %962 = vrot.lane.b32.xlu0 %v944_v12, %s1210_s18 }
 0x49d   :  { %v965_v24 = vpop.permute.xlu1 %964 }
 0x49e   :  { %v969_v45 = vadd.f32 %v965_v24, %v959_v43 }
 0x49f   :  { %v963_v46 = vpop.permute.xlu0 %962 }
 0x4a0   :  { %v979_v9 = vadd.f32 %v969_v45, %v1297_v23  ;;  %v968_v63 = vadd.f32 %v963_v46, %v944_v12  ;;  %974 = vrot.lane.b32.xlu1 %v969_v45, %s1213_s3 }
 0x4a2   :  { %v983_v48 = vmax.f32 %v979_v9, 0.0  ;;  %v978_v49 = vadd.f32 %v968_v63, %v1293_v19  ;;  %972 = vrot.lane.b32.xlu0 %v968_v63, %s1213_s3 }
 0x4a4   :  { %987 = vst.msk [vmem:[#allocation2 + $0x8] sm:$0xff] %vm45_vm0, %v983_v48  ;;  %v982_v58 = vmax.f32 %v978_v49, 0.0 }
 0x4a6   :  { %986 = vst.msk [vmem:[#allocation2] sm:$0xff] %vm45_vm0, %v982_v58 }
 0x512   :  { %v975_v50 = vpop.permute.xlu1 %974 }
 0x513   :  { %v981_v52 = vadd.f32 %v975_v50, %v1305_v33 }
 0x514   :  { %v973_v51 = vpop.permute.xlu0 %972 }
 0x515   :  { %v985_v53 = vmax.f32 %v981_v52, 0.0  ;;  %v980_v23 = vadd.f32 %v973_v51, %v1301_v27 }
 0x517   :  { %989 = vst.msk [vmem:[#allocation2 + $0x18] sm:$0xff] %vm45_vm0, %v985_v53  ;;  %v984_v54 = vmax.f32 %v980_v23, 0.0 }
 0x519   :  { %988 = vst.msk [vmem:[#allocation2 + $0x10] sm:$0xff] %vm45_vm0, %v984_v54 }
 0x51a   :  { %1198 = shalt.err (!%p1195_p4)
}
 0x51b   :  { %s1215_s28 = smov 128   ;;  %s1216_s29 = smov 8  }
 0x51c   :  { %1001 = dma.vmem_to_hbm [thread:$0]  %s996_s26, 512, %s1549_s5, [#allocation3], %s1215_s28, %s1215_s28, %s1216_s29  }
 0x51d   :  { %1207 = dma.done.wait [#allocation3], 512  }
 0x51e   :  { %1208 = vsyncadd [#allocation3], 4294966784 }
 0x51f   :  { %1005 = vsyncpa [#allocation3], 1 }

</bundles_post_ra>
